<compile_context>
chip_gen: v6e
topology: v6e:2x2x1
jax: 0.10.0
libtpu: 0.0.40
codegen_flags: <defaults>
</compile_context>

<pallas_src>
import jax
import jax.numpy as jnp
from jax.experimental import pallas as pl
from jax.experimental.pallas import tpu as pltpu

LANES = 128
SUBLANES = 8


def _make_sums_kernel(thresholds, n_valid, tile_rows, steps_per_split):
    """Kernel: per threshold accumulate [NA, NB, count(t>=thr)] as (8,128) partials."""
    T = len(thresholds)
    R = tile_rows // SUBLANES

    def kernel(p_ref, t_ref, out_ref):
        c = pl.program_id(0)   # split ("parallel") axis
        i = pl.program_id(1)   # reduction ("arbitrary") axis

        @pl.when(i == 0)
        def _init():
            out_ref[...] = jnp.zeros_like(out_ref)

        # Global flat element index of every slot in this tile. Anything >= n_valid
        # (pad tail, partial edge blocks, clamped fully-OOB blocks) is masked out.
        row0 = (c * steps_per_split + i) * tile_rows
        sub = jax.lax.broadcasted_iota(jnp.int32, (tile_rows, LANES), 0)
        lane = jax.lax.broadcasted_iota(jnp.int32, (tile_rows, LANES), 1)
        flat = (row0 + sub) * LANES + lane
        valid = flat < n_valid
        msk = valid.astype(jnp.float32)

        # Sanitize possibly-undefined data in masked-off slots (edge blocks).
        x = jnp.where(valid, p_ref[...].astype(jnp.float32), 0.0)
        y = jnp.where(valid, t_ref[...].astype(jnp.float32), 0.0)

        for ti, thr_py in enumerate(thresholds):   # tiny static unrolled loop
            thr = jnp.float32(thr_py)
            gt = jnp.where(y >= thr, msk, 0.0)     # (targets >= thr) * mask
            ls = msk - gt                          # (targets <  thr) * mask
            sigh = jax.nn.sigmoid(x - thr)         # sigm == 1 - sigh (derived in glue)
            # Reduce (tile_rows,128) -> (8,128): pure cross-vreg VPU adds, keeps the
            # accumulator tile-aligned.  Final sublane/lane reduce is JAX glue.
            na8 = (gt * sigh).reshape(R, SUBLANES, LANES).sum(axis=0)
            nb8 = (ls * sigh).reshape(R, SUBLANES, LANES).sum(axis=0)
            g8 = gt.reshape(R, SUBLANES, LANES).sum(axis=0)
            out_ref[0, 3 * ti + 0] = out_ref[0, 3 * ti + 0] + na8
            out_ref[0, 3 * ti + 1] = out_ref[0, 3 * ti + 1] + nb8
            out_ref[0, 3 * ti + 2] = out_ref[0, 3 * ti + 2] + g8

    return kernel


def _confusion_sums(preds, targets, thresholds, tile_rows=1024):
    """Returns ((T, 3) sums [NA, NB, count(targets>=thr)] per threshold, count N)."""
    T = len(thresholds)
    p = preds.reshape(-1)
    t = targets.reshape(-1)
    n = p.shape[0]

    # Pad only to a multiple of 8*128 so the slab is (rows%8==0, 128); at most 1023
    # extra elements, and a no-op when n already divides (the common case).
    chunk = SUBLANES * LANES
    n_pad = ((n + chunk - 1) // chunk) * chunk
    if n_pad != n:
        p = jnp.pad(p, (0, n_pad - n))
        t = jnp.pad(t, (0, n_pad - n))
    rows = n_pad // LANES
    p2 = p.reshape(rows, LANES)
    t2 = t.reshape(rows, LANES)

    tile_rows = min(int(tile_rows), rows)
    tile_rows = max(SUBLANES, (tile_rows // SUBLANES) * SUBLANES)
    n_blocks = pl.cdiv(rows, tile_rows)

    # Split the reduction over (up to) two row ranges so both TensorCores on a v7x
    # chip can stream from HBM concurrently; sequential (and harmless) on 1-TC chips.
    splits = 2 if n_blocks >= 2 else 1
    steps = pl.cdiv(n_blocks, splits)
    last_block = n_blocks - 1

    kernel = _make_sums_kernel(tuple(float(x) for x in thresholds), n, tile_rows, steps)

    def in_map(c, i):
        # Clamp fully-out-of-range blocks (odd n_blocks) back in range; their
        # contribution is zeroed exactly by the in-kernel validity mask.
        return (jnp.minimum(c * steps + i, last_block), 0)

    out = pl.pallas_call(
        kernel,
        out_shape=jax.ShapeDtypeStruct((splits, 3 * T, SUBLANES, LANES), jnp.float32),
        grid_spec=pltpu.PrefetchScalarGridSpec(
            num_scalar_prefetch=0,
            grid=(splits, steps),
            in_specs=[
                pl.BlockSpec((tile_rows, LANES), in_map),
                pl.BlockSpec((tile_rows, LANES), in_map),
            ],
            out_specs=pl.BlockSpec(
                (1, 3 * T, SUBLANES, LANES), lambda c, i: (c, 0, 0, 0)
            ),
        ),
        compiler_params=pltpu.CompilerParams(
            dimension_semantics=("parallel", "arbitrary")
        ),
    )(p2, t2)

    sums = out.sum(axis=(0, 2, 3)).reshape(T, 3)   # (T, 3)
    return sums, n


def diff_loss(preds, targets, thresholds, weight=None, losstype="hss"):
    assert losstype in ["hss", "hss+bias", "ts", "ts+bias", "ts+hss", "bias"]
    sums, n_elems = _confusion_sums(preds, targets, thresholds)
    if weight is None:
        weight = [1.0] * len(thresholds)

    smooth = 1e-08
    N = jnp.float32(n_elems)
    lo_total = jnp.float32(0.0)
    for i in range(len(thresholds)):
        NA = sums[i, 0]
        NB = sums[i, 1]
        n_ge = sums[i, 2]            # count(targets >= thr)
        NC = n_ge - NA               # since sigm = 1 - sigh
        ND = (N - n_ge) - NB
        if losstype == "ts":
            ts = (NA + smooth) / (NA + NB + NC + smooth)
            lo = 1.0 - ts
        elif losstype == "hss":
            expect = ((NA + NC) * (NA + NB) + (ND + NC) * (ND + NB)) / N
            hss = (NA + ND - expect + smooth) / (N - expect + smooth)
            lo = 1.0 - hss
        elif losstype == "bias":
            bias = (NA + NB + smooth) / (NA + NC + smooth)
            bias = jnp.tanh(jnp.log(bias)) ** 2
            lo = bias
        elif losstype in ("hss+bias", "bias+hss"):
            expect = (1.0 / N) * ((NA + NC) * (NA + NB) + (ND + NC) * (ND + NB))
            hss = (NA + ND - expect + smooth) / (N - expect + smooth)
            bias = (NA + NB + smooth) / (NA + NC + smooth)
            bias = jnp.tanh(jnp.log(bias)) ** 2
            lo = 1.0 - hss + bias
        elif losstype in ("ts+bias", "bias+ts"):
            ts = (NA + smooth) / (NA + NB + NC + smooth)
            bias = (NA + NB + smooth) / (NA + NC + smooth)
            bias = jnp.tanh(jnp.log(bias)) ** 2
            lo = 1.0 - ts + bias
        else:  # ts+hss
            ts = (NA + smooth) / (NA + NB + NC + smooth)
            expect = (1.0 / N) * ((NA + NC) * (NA + NB) + (ND + NC) * (ND + NB))
            hss = (NA + ND - expect + smooth) / (N - expect + smooth)
            lo = 1.0 - ts + (1.0 - hss) / 2.0
        lo_total = lo_total + lo * jnp.float32(weight[i])
    return lo_total


def diff_loss_ref(preds, targets, thresholds, weight=None, losstype="hss"):
    """Pure-JAX reference matching the PyTorch module (hss / ts exercised here)."""
    if weight is None:
        weight = [1.0] * len(thresholds)
    smooth = 1e-08
    N = jnp.float32(preds.size)
    p = preds.astype(jnp.float32)
    t = targets.astype(jnp.float32)
    lo_total = jnp.float32(0.0)
    for i, thr in enumerate(thresholds):
        gt = (t >= thr).astype(jnp.float32)
        ls = (t < thr).astype(jnp.float32)
        sigh = jax.nn.sigmoid(p - thr)
        sigm = jax.nn.sigmoid(thr - p)
        NA = jnp.sum(gt * sigh)
        NC = jnp.sum(gt * sigm)
        NB = jnp.sum(ls * sigh)
        ND = jnp.sum(ls * sigm)
        if losstype == "hss":
            expect = ((NA + NC) * (NA + NB) + (ND + NC) * (ND + NB)) / N
            hss = (NA + ND - expect + smooth) / (N - expect + smooth)
            lo = 1.0 - hss
        elif losstype == "ts":
            ts = (NA + smooth) / (NA + NB + NC + smooth)
            lo = 1.0 - ts
        else:
            raise NotImplementedError
        lo_total = lo_total + lo * weight[i]
    return lo_total


if __name__ == "__main__":
    key = jax.random.PRNGKey(0)
    k1, k2 = jax.random.split(key)
    # NCHW like the PyTorch convention.
    preds = jax.random.normal(k1, (2, 4, 16, 16), dtype=jnp.float32)
    targets = jax.random.normal(k2, (2, 4, 16, 16), dtype=jnp.float32) + 0.3
    thresholds = [0.0, 0.5, 1.0]

    loss_hss = diff_loss(preds, targets, thresholds, losstype="hss")
    loss_ts = diff_loss(preds, targets, thresholds, losstype="ts")
    jax.block_until_ready(loss_hss)
    jax.block_until_ready(loss_ts)

    ref_hss = diff_loss_ref(preds, targets, thresholds, losstype="hss")
    ref_ts = diff_loss_ref(preds, targets, thresholds, losstype="ts")
    assert jnp.allclose(loss_hss, ref_hss, rtol=1e-4, atol=1e-5), (loss_hss, ref_hss)
    assert jnp.allclose(loss_ts, ref_ts, rtol=1e-4, atol=1e-5), (loss_ts, ref_ts)

    # Ragged shape exercising the in-kernel tail mask (n not a multiple of 8*128).
    k3, k4 = jax.random.split(k2)
    p_r = jax.random.normal(k3, (2, 3, 15, 17), dtype=jnp.float32)
    t_r = jax.random.normal(k4, (2, 3, 15, 17), dtype=jnp.float32) + 0.3
    l_r = diff_loss(p_r, t_r, thresholds, weight=[1.0, 0.7, 0.3], losstype="ts")
    jax.block_until_ready(l_r)
    r_r = diff_loss_ref(p_r, t_r, thresholds, weight=[1.0, 0.7, 0.3], losstype="ts")
    assert jnp.allclose(l_r, r_r, rtol=1e-4, atol=1e-5), (l_r, r_r)

    print("KERNEL_OK")
</pallas_src>

<mosaic_0001>
module attributes {stable_mosaic.version = 11 : i64} {
  func.func @kernel(%arg0: i32, %arg1: i32, %arg2: memref<16x128xf32, #tpu.memory_space<vmem>>, %arg3: memref<16x128xf32, #tpu.memory_space<vmem>>, %arg4: memref<1x9x8x128xf32, #tpu.memory_space<vmem>>) attributes {dimension_semantics = [#tpu.dimension_semantics<parallel>, #tpu.dimension_semantics<arbitrary>], iteration_bounds = array<i64: 1, 1>, scalar_prefetch = 0 : i64, scratch_operands = 0 : i64, tpu.core_type = #tpu.core_type<tc>, window_params = [{transform_indices = @transform_0, window_bounds = array<i64: 16, 128>}, {transform_indices = @transform_1, window_bounds = array<i64: 16, 128>}, {transform_indices = @transform_2, window_bounds = array<i64: 1, 9, 8, 128>}]} {
    %c0_i32 = arith.constant 0 : i32
    %0 = arith.cmpi eq, %arg1, %c0_i32 : i32
    %1 = arith.extui %0 : i1 to i32
    %c0_i32_0 = arith.constant 0 : i32
    %2 = arith.cmpi ne, %1, %c0_i32_0 : i32
    scf.if %2 {
      %cst_90 = arith.constant 0.000000e+00 : f32
      %137 = vector.broadcast %cst_90 : f32 to vector<1x9x8x128xf32>
      %c0_91 = arith.constant 0 : index
      %c0_92 = arith.constant 0 : index
      %c0_93 = arith.constant 0 : index
      %c0_94 = arith.constant 0 : index
      %138 = vector.load %arg4[%c0_91, %c0_92, %c0_93, %c0_94] : memref<1x9x8x128xf32, #tpu.memory_space<vmem>>, vector<1x9x8x128xf32>
      tpu.vector_store %arg4[%c0_91, %c0_92, %c0_93, %c0_94], %137 {strides = array<i32>} : memref<1x9x8x128xf32, #tpu.memory_space<vmem>>, vector<1x9x8x128xf32>,
    } else {
    }
    %c1_i32 = arith.constant 1 : i32
    %3 = arith.muli %arg0, %c1_i32 : i32
    %4 = arith.addi %3, %arg1 : i32
    %c16_i32 = arith.constant 16 : i32
    %5 = arith.muli %4, %c16_i32 : i32
    %6 = tpu.iota {dimensions = array<i32: 0>} : vector<16x128xi32>
    %7 = tpu.iota {dimensions = array<i32: 1>} : vector<16x128xi32>
    %8 = vector.broadcast %5 : i32 to vector<16x128xi32>
    %9 = arith.addi %8, %6 : vector<16x128xi32>
    %c128_i32 = arith.constant 128 : i32
    %10 = vector.broadcast %c128_i32 : i32 to vector<16x128xi32>
    %11 = arith.muli %9, %10 : vector<16x128xi32>
    %12 = arith.addi %11, %7 : vector<16x128xi32>
    %c2048_i32 = arith.constant 2048 : i32
    %13 = vector.broadcast %c2048_i32 : i32 to vector<16x128xi32>
    %14 = arith.cmpi slt, %12, %13 : vector<16x128xi32>
    %15 = arith.extui %14 : vector<16x128xi1> to vector<16x128xi32>
    %16 = arith.sitofp %15 : vector<16x128xi32> to vector<16x128xf32>
    %c0 = arith.constant 0 : index
    %c0_1 = arith.constant 0 : index
    %17 = vector.load %arg2[%c0, %c0_1] : memref<16x128xf32, #tpu.memory_space<vmem>>, vector<16x128xf32>
    %cst = arith.constant 0.000000e+00 : f32
    %18 = vector.broadcast %cst : f32 to vector<16x128xf32>
    %19 = arith.select %14, %17, %18 : vector<16x128xi1>, vector<16x128xf32>
    %c0_2 = arith.constant 0 : index
    %c0_3 = arith.constant 0 : index
    %20 = vector.load %arg3[%c0_2, %c0_3] : memref<16x128xf32, #tpu.memory_space<vmem>>, vector<16x128xf32>
    %cst_4 = arith.constant 0.000000e+00 : f32
    %21 = vector.broadcast %cst_4 : f32 to vector<16x128xf32>
    %22 = arith.select %14, %20, %21 : vector<16x128xi1>, vector<16x128xf32>
    %cst_5 = arith.constant 0.000000e+00 : f32
    %23 = vector.broadcast %cst_5 : f32 to vector<16x128xf32>
    %24 = arith.cmpf oge, %22, %23 : vector<16x128xf32>
    %cst_6 = arith.constant 0.000000e+00 : f32
    %25 = vector.broadcast %cst_6 : f32 to vector<16x128xf32>
    %26 = arith.select %24, %16, %25 : vector<16x128xi1>, vector<16x128xf32>
    %27 = arith.subf %16, %26 : vector<16x128xf32>
    %cst_7 = arith.constant 0.000000e+00 : f32
    %28 = vector.broadcast %cst_7 : f32 to vector<16x128xf32>
    %29 = arith.subf %19, %28 : vector<16x128xf32>
    %30 = arith.negf %29 : vector<16x128xf32>
    %31 = math.exp %30 : vector<16x128xf32>
    %cst_8 = arith.constant 1.000000e+00 : f32
    %32 = vector.broadcast %cst_8 : f32 to vector<16x128xf32>
    %33 = arith.addf %32, %31 : vector<16x128xf32>
    %34 = arith.divf %32, %33 : vector<16x128xf32>
    %35 = arith.mulf %26, %34 : vector<16x128xf32>
    %36 = vector.shape_cast %35 : vector<16x128xf32> to vector<2x8x128xf32>
    %cst_9 = arith.constant dense<0.000000e+00> : vector<8x128xf32>
    %37 = vector.multi_reduction <add>, %36, %cst_9 [0] : vector<2x8x128xf32> to vector<8x128xf32>
    %38 = arith.mulf %27, %34 : vector<16x128xf32>
    %39 = vector.shape_cast %38 : vector<16x128xf32> to vector<2x8x128xf32>
    %cst_10 = arith.constant dense<0.000000e+00> : vector<8x128xf32>
    %40 = vector.multi_reduction <add>, %39, %cst_10 [0] : vector<2x8x128xf32> to vector<8x128xf32>
    %41 = vector.shape_cast %26 : vector<16x128xf32> to vector<2x8x128xf32>
    %cst_11 = arith.constant dense<0.000000e+00> : vector<8x128xf32>
    %42 = vector.multi_reduction <add>, %41, %cst_11 [0] : vector<2x8x128xf32> to vector<8x128xf32>
    %c0_12 = arith.constant 0 : index
    %c0_13 = arith.constant 0 : index
    %c0_14 = arith.constant 0 : index
    %c0_15 = arith.constant 0 : index
    %43 = vector.load %arg4[%c0_12, %c0_13, %c0_14, %c0_15] : memref<1x9x8x128xf32, #tpu.memory_space<vmem>>, vector<1x1x8x128xf32>
    %44 = vector.shape_cast %43 : vector<1x1x8x128xf32> to vector<8x128xf32>
    %45 = arith.addf %44, %37 : vector<8x128xf32>
    %c0_16 = arith.constant 0 : index
    %c0_17 = arith.constant 0 : index
    %c0_18 = arith.constant 0 : index
    %c0_19 = arith.constant 0 : index
    %46 = vector.load %arg4[%c0_16, %c0_17, %c0_18, %c0_19] : memref<1x9x8x128xf32, #tpu.memory_space<vmem>>, vector<1x1x8x128xf32>
    %47 = vector.shape_cast %46 : vector<1x1x8x128xf32> to vector<8x128xf32>
    %48 = vector.shape_cast %45 : vector<8x128xf32> to vector<1x1x8x128xf32>
    tpu.vector_store %arg4[%c0_16, %c0_17, %c0_18, %c0_19], %48 {strides = array<i32>} : memref<1x9x8x128xf32, #tpu.memory_space<vmem>>, vector<1x1x8x128xf32>,
    %c0_20 = arith.constant 0 : index
    %c1 = arith.constant 1 : index
    %c0_21 = arith.constant 0 : index
    %c0_22 = arith.constant 0 : index
    %49 = vector.load %arg4[%c0_20, %c1, %c0_21, %c0_22] : memref<1x9x8x128xf32, #tpu.memory_space<vmem>>, vector<1x1x8x128xf32>
    %50 = vector.shape_cast %49 : vector<1x1x8x128xf32> to vector<8x128xf32>
    %51 = arith.addf %50, %40 : vector<8x128xf32>
    %c0_23 = arith.constant 0 : index
    %c1_24 = arith.constant 1 : index
    %c0_25 = arith.constant 0 : index
    %c0_26 = arith.constant 0 : index
    %52 = vector.load %arg4[%c0_23, %c1_24, %c0_25, %c0_26] : memref<1x9x8x128xf32, #tpu.memory_space<vmem>>, vector<1x1x8x128xf32>
    %53 = vector.shape_cast %52 : vector<1x1x8x128xf32> to vector<8x128xf32>
    %54 = vector.shape_cast %51 : vector<8x128xf32> to vector<1x1x8x128xf32>
    tpu.vector_store %arg4[%c0_23, %c1_24, %c0_25, %c0_26], %54 {strides = array<i32>} : memref<1x9x8x128xf32, #tpu.memory_space<vmem>>, vector<1x1x8x128xf32>,
    %c0_27 = arith.constant 0 : index
    %c2 = arith.constant 2 : index
    %c0_28 = arith.constant 0 : index
    %c0_29 = arith.constant 0 : index
    %55 = vector.load %arg4[%c0_27, %c2, %c0_28, %c0_29] : memref<1x9x8x128xf32, #tpu.memory_space<vmem>>, vector<1x1x8x128xf32>
    %56 = vector.shape_cast %55 : vector<1x1x8x128xf32> to vector<8x128xf32>
    %57 = arith.addf %56, %42 : vector<8x128xf32>
    %c0_30 = arith.constant 0 : index
    %c2_31 = arith.constant 2 : index
    %c0_32 = arith.constant 0 : index
    %c0_33 = arith.constant 0 : index
    %58 = vector.load %arg4[%c0_30, %c2_31, %c0_32, %c0_33] : memref<1x9x8x128xf32, #tpu.memory_space<vmem>>, vector<1x1x8x128xf32>
    %59 = vector.shape_cast %58 : vector<1x1x8x128xf32> to vector<8x128xf32>
    %60 = vector.shape_cast %57 : vector<8x128xf32> to vector<1x1x8x128xf32>
    tpu.vector_store %arg4[%c0_30, %c2_31, %c0_32, %c0_33], %60 {strides = array<i32>} : memref<1x9x8x128xf32, #tpu.memory_space<vmem>>, vector<1x1x8x128xf32>,
    %cst_34 = arith.constant 5.000000e-01 : f32
    %61 = vector.broadcast %cst_34 : f32 to vector<16x128xf32>
    %62 = arith.cmpf oge, %22, %61 : vector<16x128xf32>
    %cst_35 = arith.constant 0.000000e+00 : f32
    %63 = vector.broadcast %cst_35 : f32 to vector<16x128xf32>
    %64 = arith.select %62, %16, %63 : vector<16x128xi1>, vector<16x128xf32>
    %65 = arith.subf %16, %64 : vector<16x128xf32>
    %cst_36 = arith.constant 5.000000e-01 : f32
    %66 = vector.broadcast %cst_36 : f32 to vector<16x128xf32>
    %67 = arith.subf %19, %66 : vector<16x128xf32>
    %68 = arith.negf %67 : vector<16x128xf32>
    %69 = math.exp %68 : vector<16x128xf32>
    %cst_37 = arith.constant 1.000000e+00 : f32
    %70 = vector.broadcast %cst_37 : f32 to vector<16x128xf32>
    %71 = arith.addf %70, %69 : vector<16x128xf32>
    %72 = arith.divf %70, %71 : vector<16x128xf32>
    %73 = arith.mulf %64, %72 : vector<16x128xf32>
    %74 = vector.shape_cast %73 : vector<16x128xf32> to vector<2x8x128xf32>
    %cst_38 = arith.constant dense<0.000000e+00> : vector<8x128xf32>
    %75 = vector.multi_reduction <add>, %74, %cst_38 [0] : vector<2x8x128xf32> to vector<8x128xf32>
    %76 = arith.mulf %65, %72 : vector<16x128xf32>
    %77 = vector.shape_cast %76 : vector<16x128xf32> to vector<2x8x128xf32>
    %cst_39 = arith.constant dense<0.000000e+00> : vector<8x128xf32>
    %78 = vector.multi_reduction <add>, %77, %cst_39 [0] : vector<2x8x128xf32> to vector<8x128xf32>
    %79 = vector.shape_cast %64 : vector<16x128xf32> to vector<2x8x128xf32>
    %cst_40 = arith.constant dense<0.000000e+00> : vector<8x128xf32>
    %80 = vector.multi_reduction <add>, %79, %cst_40 [0] : vector<2x8x128xf32> to vector<8x128xf32>
    %c0_41 = arith.constant 0 : index
    %c3 = arith.constant 3 : index
    %c0_42 = arith.constant 0 : index
    %c0_43 = arith.constant 0 : index
    %81 = vector.load %arg4[%c0_41, %c3, %c0_42, %c0_43] : memref<1x9x8x128xf32, #tpu.memory_space<vmem>>, vector<1x1x8x128xf32>
    %82 = vector.shape_cast %81 : vector<1x1x8x128xf32> to vector<8x128xf32>
    %83 = arith.addf %82, %75 : vector<8x128xf32>
    %c0_44 = arith.constant 0 : index
    %c3_45 = arith.constant 3 : index
    %c0_46 = arith.constant 0 : index
    %c0_47 = arith.constant 0 : index
    %84 = vector.load %arg4[%c0_44, %c3_45, %c0_46, %c0_47] : memref<1x9x8x128xf32, #tpu.memory_space<vmem>>, vector<1x1x8x128xf32>
    %85 = vector.shape_cast %84 : vector<1x1x8x128xf32> to vector<8x128xf32>
    %86 = vector.shape_cast %83 : vector<8x128xf32> to vector<1x1x8x128xf32>
    tpu.vector_store %arg4[%c0_44, %c3_45, %c0_46, %c0_47], %86 {strides = array<i32>} : memref<1x9x8x128xf32, #tpu.memory_space<vmem>>, vector<1x1x8x128xf32>,
    %c0_48 = arith.constant 0 : index
    %c4 = arith.constant 4 : index
    %c0_49 = arith.constant 0 : index
    %c0_50 = arith.constant 0 : index
    %87 = vector.load %arg4[%c0_48, %c4, %c0_49, %c0_50] : memref<1x9x8x128xf32, #tpu.memory_space<vmem>>, vector<1x1x8x128xf32>
    %88 = vector.shape_cast %87 : vector<1x1x8x128xf32> to vector<8x128xf32>
    %89 = arith.addf %88, %78 : vector<8x128xf32>
    %c0_51 = arith.constant 0 : index
    %c4_52 = arith.constant 4 : index
    %c0_53 = arith.constant 0 : index
    %c0_54 = arith.constant 0 : index
    %90 = vector.load %arg4[%c0_51, %c4_52, %c0_53, %c0_54] : memref<1x9x8x128xf32, #tpu.memory_space<vmem>>, vector<1x1x8x128xf32>
    %91 = vector.shape_cast %90 : vector<1x1x8x128xf32> to vector<8x128xf32>
    %92 = vector.shape_cast %89 : vector<8x128xf32> to vector<1x1x8x128xf32>
    tpu.vector_store %arg4[%c0_51, %c4_52, %c0_53, %c0_54], %92 {strides = array<i32>} : memref<1x9x8x128xf32, #tpu.memory_space<vmem>>, vector<1x1x8x128xf32>,
    %c0_55 = arith.constant 0 : index
    %c5 = arith.constant 5 : index
    %c0_56 = arith.constant 0 : index
    %c0_57 = arith.constant 0 : index
    %93 = vector.load %arg4[%c0_55, %c5, %c0_56, %c0_57] : memref<1x9x8x128xf32, #tpu.memory_space<vmem>>, vector<1x1x8x128xf32>
    %94 = vector.shape_cast %93 : vector<1x1x8x128xf32> to vector<8x128xf32>
    %95 = arith.addf %94, %80 : vector<8x128xf32>
    %c0_58 = arith.constant 0 : index
    %c5_59 = arith.constant 5 : index
    %c0_60 = arith.constant 0 : index
    %c0_61 = arith.constant 0 : index
    %96 = vector.load %arg4[%c0_58, %c5_59, %c0_60, %c0_61] : memref<1x9x8x128xf32, #tpu.memory_space<vmem>>, vector<1x1x8x128xf32>
    %97 = vector.shape_cast %96 : vector<1x1x8x128xf32> to vector<8x128xf32>
    %98 = vector.shape_cast %95 : vector<8x128xf32> to vector<1x1x8x128xf32>
    tpu.vector_store %arg4[%c0_58, %c5_59, %c0_60, %c0_61], %98 {strides = array<i32>} : memref<1x9x8x128xf32, #tpu.memory_space<vmem>>, vector<1x1x8x128xf32>,
    %cst_62 = arith.constant 1.000000e+00 : f32
    %99 = vector.broadcast %cst_62 : f32 to vector<16x128xf32>
    %100 = arith.cmpf oge, %22, %99 : vector<16x128xf32>
    %cst_63 = arith.constant 0.000000e+00 : f32
    %101 = vector.broadcast %cst_63 : f32 to vector<16x128xf32>
    %102 = arith.select %100, %16, %101 : vector<16x128xi1>, vector<16x128xf32>
    %103 = arith.subf %16, %102 : vector<16x128xf32>
    %cst_64 = arith.constant 1.000000e+00 : f32
    %104 = vector.broadcast %cst_64 : f32 to vector<16x128xf32>
    %105 = arith.subf %19, %104 : vector<16x128xf32>
    %106 = arith.negf %105 : vector<16x128xf32>
    %107 = math.exp %106 : vector<16x128xf32>
    %cst_65 = arith.constant 1.000000e+00 : f32
    %108 = vector.broadcast %cst_65 : f32 to vector<16x128xf32>
    %109 = arith.addf %108, %107 : vector<16x128xf32>
    %110 = arith.divf %108, %109 : vector<16x128xf32>
    %111 = arith.mulf %102, %110 : vector<16x128xf32>
    %112 = vector.shape_cast %111 : vector<16x128xf32> to vector<2x8x128xf32>
    %cst_66 = arith.constant dense<0.000000e+00> : vector<8x128xf32>
    %113 = vector.multi_reduction <add>, %112, %cst_66 [0] : vector<2x8x128xf32> to vector<8x128xf32>
    %114 = arith.mulf %103, %110 : vector<16x128xf32>
    %115 = vector.shape_cast %114 : vector<16x128xf32> to vector<2x8x128xf32>
    %cst_67 = arith.constant dense<0.000000e+00> : vector<8x128xf32>
    %116 = vector.multi_reduction <add>, %115, %cst_67 [0] : vector<2x8x128xf32> to vector<8x128xf32>
    %117 = vector.shape_cast %102 : vector<16x128xf32> to vector<2x8x128xf32>
    %cst_68 = arith.constant dense<0.000000e+00> : vector<8x128xf32>
    %118 = vector.multi_reduction <add>, %117, %cst_68 [0] : vector<2x8x128xf32> to vector<8x128xf32>
    %c0_69 = arith.constant 0 : index
    %c6 = arith.constant 6 : index
    %c0_70 = arith.constant 0 : index
    %c0_71 = arith.constant 0 : index
    %119 = vector.load %arg4[%c0_69, %c6, %c0_70, %c0_71] : memref<1x9x8x128xf32, #tpu.memory_space<vmem>>, vector<1x1x8x128xf32>
    %120 = vector.shape_cast %119 : vector<1x1x8x128xf32> to vector<8x128xf32>
    %121 = arith.addf %120, %113 : vector<8x128xf32>
    %c0_72 = arith.constant 0 : index
    %c6_73 = arith.constant 6 : index
    %c0_74 = arith.constant 0 : index
    %c0_75 = arith.constant 0 : index
    %122 = vector.load %arg4[%c0_72, %c6_73, %c0_74, %c0_75] : memref<1x9x8x128xf32, #tpu.memory_space<vmem>>, vector<1x1x8x128xf32>
    %123 = vector.shape_cast %122 : vector<1x1x8x128xf32> to vector<8x128xf32>
    %124 = vector.shape_cast %121 : vector<8x128xf32> to vector<1x1x8x128xf32>
    tpu.vector_store %arg4[%c0_72, %c6_73, %c0_74, %c0_75], %124 {strides = array<i32>} : memref<1x9x8x128xf32, #tpu.memory_space<vmem>>, vector<1x1x8x128xf32>,
    %c0_76 = arith.constant 0 : index
    %c7 = arith.constant 7 : index
    %c0_77 = arith.constant 0 : index
    %c0_78 = arith.constant 0 : index
    %125 = vector.load %arg4[%c0_76, %c7, %c0_77, %c0_78] : memref<1x9x8x128xf32, #tpu.memory_space<vmem>>, vector<1x1x8x128xf32>
    %126 = vector.shape_cast %125 : vector<1x1x8x128xf32> to vector<8x128xf32>
    %127 = arith.addf %126, %116 : vector<8x128xf32>
    %c0_79 = arith.constant 0 : index
    %c7_80 = arith.constant 7 : index
    %c0_81 = arith.constant 0 : index
    %c0_82 = arith.constant 0 : index
    %128 = vector.load %arg4[%c0_79, %c7_80, %c0_81, %c0_82] : memref<1x9x8x128xf32, #tpu.memory_space<vmem>>, vector<1x1x8x128xf32>
    %129 = vector.shape_cast %128 : vector<1x1x8x128xf32> to vector<8x128xf32>
    %130 = vector.shape_cast %127 : vector<8x128xf32> to vector<1x1x8x128xf32>
    tpu.vector_store %arg4[%c0_79, %c7_80, %c0_81, %c0_82], %130 {strides = array<i32>} : memref<1x9x8x128xf32, #tpu.memory_space<vmem>>, vector<1x1x8x128xf32>,
    %c0_83 = arith.constant 0 : index
    %c8 = arith.constant 8 : index
    %c0_84 = arith.constant 0 : index
    %c0_85 = arith.constant 0 : index
    %131 = vector.load %arg4[%c0_83, %c8, %c0_84, %c0_85] : memref<1x9x8x128xf32, #tpu.memory_space<vmem>>, vector<1x1x8x128xf32>
    %132 = vector.shape_cast %131 : vector<1x1x8x128xf32> to vector<8x128xf32>
    %133 = arith.addf %132, %118 : vector<8x128xf32>
    %c0_86 = arith.constant 0 : index
    %c8_87 = arith.constant 8 : index
    %c0_88 = arith.constant 0 : index
    %c0_89 = arith.constant 0 : index
    %134 = vector.load %arg4[%c0_86, %c8_87, %c0_88, %c0_89] : memref<1x9x8x128xf32, #tpu.memory_space<vmem>>, vector<1x1x8x128xf32>
    %135 = vector.shape_cast %134 : vector<1x1x8x128xf32> to vector<8x128xf32>
    %136 = vector.shape_cast %133 : vector<8x128xf32> to vector<1x1x8x128xf32>
    tpu.vector_store %arg4[%c0_86, %c8_87, %c0_88, %c0_89], %136 {strides = array<i32>} : memref<1x9x8x128xf32, #tpu.memory_space<vmem>>, vector<1x1x8x128xf32>,
    return
  }
  func.func @transform_0(%arg0: i32, %arg1: i32) -> (i32, i32) {
    %c1_i32 = arith.constant 1 : i32
    %0 = arith.muli %arg0, %c1_i32 : i32
    %1 = arith.addi %0, %arg1 : i32
    %c0_i32 = arith.constant 0 : i32
    %2 = arith.minsi %1, %c0_i32 : i32
    %c0_i32_0 = arith.constant 0 : i32
    %c0_i32_1 = arith.constant 0 : i32
    return %2, %c0_i32_0 : i32, i32
  }
  func.func @transform_1(%arg0: i32, %arg1: i32) -> (i32, i32) {
    %c1_i32 = arith.constant 1 : i32
    %0 = arith.muli %arg0, %c1_i32 : i32
    %1 = arith.addi %0, %arg1 : i32
    %c0_i32 = arith.constant 0 : i32
    %2 = arith.minsi %1, %c0_i32 : i32
    %c0_i32_0 = arith.constant 0 : i32
    %c0_i32_1 = arith.constant 0 : i32
    return %2, %c0_i32_0 : i32, i32
  }
  func.func @transform_2(%arg0: i32, %arg1: i32) -> (i32, i32, i32, i32) {
    %c0_i32 = arith.constant 0 : i32
    %c0_i32_0 = arith.constant 0 : i32
    %c0_i32_1 = arith.constant 0 : i32
    %c0_i32_2 = arith.constant 0 : i32
    return %arg0, %c0_i32, %c0_i32_0, %c0_i32_1 : i32, i32, i32, i32
  }
}

</mosaic_0001>

<bundles_post_ra>
// kernel: tpu_custom_call.1
= control target key start
LH: loop header
LB: loop body
LE: loop exit
PB: predicated region body
PF: predicated region fallthrough
CT: control target
= control target key end

     0   :  { %7 = vsyncpa [#allocation3], 0  ;;  %s400_s0 = inlined_call_operand.hbm [shape: f32[16,128], index: 0, kind: input, shape index: {}]   ;;  %s401_s1 = inlined_call_operand.hbm [shape: f32[16,128], index: 1, kind: input, shape index: {}]   ;;  %s402_s2 = inlined_call_operand.hbm [shape: f32[1,9,8,128], index: 2, kind: output, shape index: {}]  }
   0x1   :  { %8 = vsyncpa [#allocation6], 0 }
   0x2   :  { %9 = vsyncpa [#allocation4], 0  ;;  %s345_s9 = smov [#allocation2]  }
   0x3   :  { %s21_s10 = sshll.u32 %s345_s9, 4  ;;  %s22_s10 = int_to_ptr.vmem [resolvable:$true] %s21_s10 }
   0x4   :  { %s287_s11 = scalar_lea.vmem %s22_s10, 256  ;;  %p292_p1 = scmp.lt.s32.totalorder %s22_s10, %s22_s10 }
   0x5   :  { %p288_p0 = scmp.ne.s32.totalorder %s22_s10, %s287_s11  ;;  %p293_p2 = scmp.lt.s32.totalorder %s287_s11, %s287_s11 }
   0x7   :  { %p294_p3 = por %p293_p2, %p292_p1 }
   0x9   :  { %p295_p4 = pnand %p294_p3, %p288_p0 }
   0xb   :  { %298 = shalt.err (!%p295_p4)
}
   0xc   :  { %s346_s12 = smov 128   ;;  %s347_s13 = smov 8  }
   0xd   :  { %27 = dma.hbm_to_vmem [thread:$0]  %s400_s0, 256, %s22_s10, [#allocation3], %s346_s12, %s346_s12, %s347_s13  }
   0xe   :  { %s348_s16 = smov [#allocation5]  }
   0xf   :  { %s39_s17 = sshll.u32 %s348_s16, 4  ;;  %s40_s17 = int_to_ptr.vmem [resolvable:$true] %s39_s17 }
  0x10   :  { %s307_s18 = scalar_lea.vmem %s40_s17, 256  ;;  %p312_p6 = scmp.lt.s32.totalorder %s40_s17, %s40_s17 }
  0x11   :  { %p308_p5 = scmp.ne.s32.totalorder %s40_s17, %s307_s18  ;;  %p313_p7 = scmp.lt.s32.totalorder %s307_s18, %s307_s18 }
  0x13   :  { %p314_p8 = por %p313_p7, %p312_p6 }
  0x15   :  { %p315_p9 = pnand %p314_p8, %p308_p5 }
  0x17   :  { %318 = shalt.err (!%p315_p9)
}
  0x18   :  { %45 = dma.hbm_to_vmem [thread:$0]  %s401_s1, 256, %s40_s17, [#allocation6], %s346_s12, %s346_s12, %s347_s13  }
  0x19   :  { %339 = dma.done.wait [#allocation3], 256  }
  0x1a   :  { %340 = vsyncadd [#allocation3], 4294967040 }
  0x1b   :  { %341 = dma.done.wait [#allocation6], 256  }
  0x1c   :  { %342 = vsyncadd [#allocation6], 4294967040  ;;  %v75_v0 = vlaneseq  ;;  %v93_v7 = vld [vmem:[#allocation2] sm:$0xff]  ;;  %v97_v8 = vld [vmem:[#allocation5] sm:$0xff]  ;;  %v349_v14 = vmov 0.0   ;;  %s350_s0 = smov [#allocation7]  }
  0x1d   :  { %v94_v10 = vld [vmem:[#allocation2 + $0x8] sm:$0xff]  ;;  %v98_v11 = vld [vmem:[#allocation5 + $0x8] sm:$0xff]  ;;  %s220_s1 = sshll.u32 %s350_s0, 4  ;;  %s221_s1 = int_to_ptr.vmem [resolvable:$true] %s220_s1 }
  0x1e   :  { %v76_v1 = vshrl.u32 %v75_v0, 7  ;;  %v79_v2 = vand.u32 127, %v75_v0  ;;  %s319_s21 = scalar_lea.vmem %s221_s1, 1152  ;;  %p324_p11 = scmp.lt.s32.totalorder %s221_s1, %s221_s1 }
  0x1f   :  { %p320_p10 = scmp.ne.s32.totalorder %s221_s1, %s319_s21  ;;  %p325_p12 = scmp.lt.s32.totalorder %s319_s21, %s319_s21 }
  0x20   :  { %v77_v3 = vadd.s32 8, %v76_v1  ;;  %v83_v4 = vmul.u32 128, %v76_v1 }
  0x21   :  { %p326_p13 = por %p325_p12, %p324_p11 }
  0x22   :  { %v84_v5 = vmul.u32 128, %v77_v3  ;;  %v85_v6 = vadd.s32 %v83_v4, %v79_v2 }
  0x23   :  { %p327_p0 = pnand %p326_p13, %p320_p10 }
  0x24   :  { %v86_v9 = vadd.s32 %v84_v5, %v79_v2  ;;  %vm87_vm0 = vcmp.lt.s32.totalorder %v85_v6, 2048 }
  0x25   :  { %v95_v12 = vsel %vm87_vm0, %v93_v7, 0.0  ;;  %v99_v13 = vsel %vm87_vm0, %v97_v8, 0.0  ;;  %v378_v15 = vsel %vm87_vm0, 1.0, %v349_v14 }
  0x26   :  { %vm88_vm1 = vcmp.lt.s32.totalorder %v86_v9, 2048  ;;  %v239_v16 = vmul.f32 -1.442695, %v95_v12  ;;  %v241_v17 = vadd.f32 -0.5, %v95_v12  ;;  %vm101_vm2 = vcmp.ge.f32.partialorder %v99_v13, 0.0 }
  0x27   :  { %v380_v18 = vsel %vm88_vm1, 1.0, %v349_v14  ;;  %v96_v19 = vsel %vm88_vm1, %v94_v10, 0.0  ;;  %v100_v20 = vsel %vm88_vm1, %v98_v11, 0.0  ;;  %v245_v24 = vadd.f32 -1.0, %v95_v12 }
  0x28   :  { %vm102_vm3 = vcmp.ge.f32.partialorder %v100_v20, 0.0  ;;  %255 = vpow2.f32 %v239_v16  ;;  %v240_v21 = vmul.f32 -1.442695, %v96_v19  ;;  %v242_v22 = vadd.f32 -0.5, %v96_v19 }
  0x29   :  { %v243_v23 = vmul.f32 -1.442695, %v241_v17  ;;  %v246_v25 = vadd.f32 -1.0, %v96_v19  ;;  %v103_v26 = vsel %vm101_vm2, %v378_v15, 0.0  ;;  %v104_v27 = vsel %vm102_vm3, %v380_v18, 0.0 }
  0x2a   :  { %257 = vpow2.f32 %v240_v21  ;;  %v244_v28 = vmul.f32 -1.442695, %v242_v22  ;;  %v247_v29 = vmul.f32 -1.442695, %v245_v24  ;;  %v125_v31 = vadd.f32 %v104_v27, %v103_v26 }
  0x2b   :  { %259 = vpow2.f32 %v243_v23  ;;  %v248_v30 = vmul.f32 -1.442695, %v246_v25  ;;  %vm137_vm4 = vcmp.ge.f32.partialorder %v99_v13, 0.5  ;;  %vm138_vm5 = vcmp.ge.f32.partialorder %v100_v20, 0.5 }
  0x2c   :  { %261 = vpow2.f32 %v244_v28  ;;  %vm176_vm6 = vcmp.ge.f32.partialorder %v99_v13, 1.0  ;;  %v139_v32 = vsel %vm137_vm4, %v378_v15, 0.0  ;;  %v140_v33 = vsel %vm138_vm5, %v380_v18, 0.0  ;;  %136 = vst [vmem:[#allocation7 + $0x10] sm:$0xff] %v125_v31 }
  0x2d   :  { %263 = vpow2.f32 %v247_v29  ;;  %v163_v34 = vadd.f32 %v140_v33, %v139_v32  ;;  %vm177_vm7 = vcmp.ge.f32.partialorder %v100_v20, 1.0  ;;  %v178_v35 = vsel %vm176_vm6, %v378_v15, 0.0 }
  0x2e   :  { %265 = vpow2.f32 %v248_v30  ;;  %v179_v36 = vsel %vm177_vm7, %v380_v18, 0.0  ;;  %v105_v50 = vsub.f32 %v378_v15, %v103_v26  ;;  %v106_v51 = vsub.f32 %v380_v18, %v104_v27 }
  0x2f   :  { %v202_v37 = vadd.f32 %v179_v36, %v178_v35  ;;  %175 = vst [vmem:[#allocation7 + $0x28] sm:$0xff] %v163_v34  ;;  %v141_v53 = vsub.f32 %v378_v15, %v139_v32  ;;  %v142_v56 = vsub.f32 %v380_v18, %v140_v33  ;;  %v180_v58 = vsub.f32 %v378_v15, %v178_v35 }
  0x30   :  { %v181_v1 = vsub.f32 %v380_v18, %v179_v36 }
  0x31   :  { %214 = vst [vmem:[#allocation7 + $0x40] sm:$0xff] %v202_v37 }
  0x35   :  { %v256_v38 = vpop.eup %255 }
  0x36   :  { %v113_v39 = vadd.f32 1.0, %v256_v38 }
  0x37   :  { %v258_v40 = vpop.eup %257 }
  0x38   :  { %v260_v41 = vpop.eup %259  ;;  %v114_v42 = vadd.f32 1.0, %v258_v40  ;;  %267 = vrcp.f32 %v113_v39 }
  0x39   :  { %v262_v43 = vpop.eup %261  ;;  %v151_v44 = vadd.f32 1.0, %v260_v41 }
  0x3a   :  { %v264_v45 = vpop.eup %263  ;;  %269 = vrcp.f32 %v114_v42  ;;  %v152_v46 = vadd.f32 1.0, %v262_v43 }
  0x3b   :  { %v266_v47 = vpop.eup %265  ;;  %271 = vrcp.f32 %v151_v44  ;;  %v190_v48 = vadd.f32 1.0, %v264_v45 }
  0x3c   :  { %273 = vrcp.f32 %v152_v46  ;;  %v191_v49 = vadd.f32 1.0, %v266_v47 }
  0x3d   :  { %275 = vrcp.f32 %v190_v48 }
  0x3e   :  { %277 = vrcp.f32 %v191_v49 }
  0x45   :  { %v268_v52 = vpop.eup %267 }
  0x46   :  { %v119_v54 = vmul.f32 %v268_v52, %v103_v26  ;;  %v122_v55 = vmul.f32 %v268_v52, %v105_v50 }
  0x47   :  { %v270_v57 = vpop.eup %269 }
  0x48   :  { %v272_v59 = vpop.eup %271  ;;  %v120_v60 = vmul.f32 %v270_v57, %v104_v27  ;;  %v123_v61 = vmul.f32 %v270_v57, %v106_v51 }
  0x49   :  { %v274_v62 = vpop.eup %273  ;;  %v157_v63 = vmul.f32 %v272_v59, %v139_v32  ;;  %v160_v0 = vmul.f32 %v272_v59, %v141_v53 }
  0x4a   :  { %v276_v2 = vpop.eup %275  ;;  %v121_v3 = vadd.f32 %v120_v60, %v119_v54  ;;  %v124_v4 = vadd.f32 %v123_v61, %v122_v55  ;;  %v158_v5 = vmul.f32 %v274_v62, %v140_v33  ;;  %v161_v6 = vmul.f32 %v274_v62, %v142_v56 }
  0x4b   :  { %v278_v7 = vpop.eup %277  ;;  %v196_v8 = vmul.f32 %v276_v2, %v178_v35  ;;  %v199_v9 = vmul.f32 %v276_v2, %v180_v58 }
  0x4c   :  { %v159_v10 = vadd.f32 %v158_v5, %v157_v63  ;;  %v162_v11 = vadd.f32 %v161_v6, %v160_v0  ;;  %v197_v12 = vmul.f32 %v278_v7, %v179_v36  ;;  %v200_v13 = vmul.f32 %v278_v7, %v181_v1  ;;  %128 = vst [vmem:[#allocation7] sm:$0xff] %v121_v3 }
  0x4d   :  { %132 = vst [vmem:[#allocation7 + $0x8] sm:$0xff] %v124_v4 }
  0x4e   :  { %v198_v14 = vadd.f32 %v197_v12, %v196_v8  ;;  %v201_v15 = vadd.f32 %v200_v13, %v199_v9  ;;  %167 = vst [vmem:[#allocation7 + $0x18] sm:$0xff] %v159_v10  ;;  %171 = vst [vmem:[#allocation7 + $0x20] sm:$0xff] %v162_v11 }
  0x50   :  { %206 = vst [vmem:[#allocation7 + $0x30] sm:$0xff] %v198_v14  ;;  %210 = vst [vmem:[#allocation7 + $0x38] sm:$0xff] %v201_v15 }
  0x51   :  { %330 = shalt.err (!%p327_p0)
}
  0x52   :  { %226 = dma.vmem_to_hbm [thread:$0]  %s221_s1, 1152, %s402_s2, [#allocation4], %s346_s12, %s346_s12, %s347_s13  }
  0x53   :  { %343 = dma.done.wait [#allocation4], 1152  }
  0x54   :  { %344 = vsyncadd [#allocation4], 4294966144 }
  0x55   :  { %230 = vsyncpa [#allocation3], 1 }
  0x56   :  { %231 = vsyncpa [#allocation6], 1 }
  0x57   :  { %232 = vsyncpa [#allocation4], 1 }

</bundles_post_ra>
